<compile_context>
chip_gen: v6e
topology: v6e:2x2x1
jax: 0.10.0
libtpu: 0.0.40
codegen_flags: <defaults>
</compile_context>

<pallas_src>
import jax
import jax.numpy as jnp
from jax.experimental import pallas as pl
from jax.experimental.pallas import tpu as pltpu

_LANES = 128        # vreg lane width: last dim of every data tile
_TILE_ROWS = 4096   # 4096x128 f32 = 2 MiB/block; fixed constant (no per-N recompile of the tiling)


def linear_kernel(w_ref, b_ref, x_ref, o_ref):
    # w/b are SMEM scalars: one scalar-path read each, broadcast for free into the VPU
    # multiply-add. x/o are lane-dense (TILE_ROWS, 128) VMEM tiles -> full-width unmasked
    # vst on interior tiles; Pallas itself masks the ragged final tile.
    w = w_ref[0, 0]
    b = b_ref[0, 0]
    o_ref[...] = x_ref[...] * w + b


def _linear_forward_slab(slab, weight, bias):
    """Core Pallas call on a lane-dense (rows, 128) f32 slab.

    Callers that can keep their data in this layout should call this directly
    (no pad / slice round trips at all)."""
    rows = slab.shape[0]
    elems = rows * _LANES
    return pl.pallas_call(
        linear_kernel,
        out_shape=jax.ShapeDtypeStruct((rows, _LANES), slab.dtype),
        grid_spec=pl.GridSpec(
            grid=(pl.cdiv(rows, _TILE_ROWS),),
            in_specs=[
                # 4-byte params ride the scalar path: no VMEM tile DMA / double-buffering.
                pl.BlockSpec(memory_space=pltpu.MemorySpace.SMEM),
                pl.BlockSpec(memory_space=pltpu.MemorySpace.SMEM),
                # Lane-dense data tiles, (8,128)-aligned. The block does NOT need to divide
                # `rows` -- Pallas masks the ragged last block, so there is no tile-multiple
                # over-padding and no garbage DMA/compute.
                pl.BlockSpec((_TILE_ROWS, _LANES), lambda i: (i, 0)),
            ],
            out_specs=pl.BlockSpec((_TILE_ROWS, _LANES), lambda i: (i, 0)),
        ),
        # Pure HBM streaming: 2 flops and 8 bytes per element. Tells XLA's scheduler this
        # custom call is bandwidth-heavy so it overlaps it correctly with neighboring ops.
        cost_estimate=pl.CostEstimate(
            flops=2 * elems, transcendentals=0, bytes_accessed=2 * 4 * elems),
        compiler_params=pltpu.CompilerParams(
            # Row tiles are independent. On single-TC chips (v5e/v6e) this is just the
            # sequential auto-pipelined loop; genuinely engaging both v7x TensorCores would
            # need CORE_PARALLEL / pl.core_map, but the op is HBM-bound either way.
            dimension_semantics=("parallel",),
        ),
    )(weight.reshape(1, 1), bias.reshape(1, 1), slab)


@jax.jit
def linear_forward(x, weight, bias):
    """LinearModel forward: y = x @ W.T + b for W:(1,1), b:(1,). x:(N,1) f32 -> (N,1) f32."""
    n = x.shape[0]
    # NOTE: for a standalone y = x*w + b a single fused XLA elementwise op is already optimal;
    # the Pallas path exists so the kernel itself is exercised / fusable into larger kernels.
    flat = x.reshape(-1)
    rows = pl.cdiv(n, _LANES)
    pad = rows * _LANES - n          # static (shape-derived)
    if pad:
        # Only the <=127-element lane tail is padded (never up to a tile multiple).
        flat = jnp.pad(flat, (0, pad))
    slab = flat.reshape(rows, _LANES)        # free reshape when pad == 0 (zero-copy fast path)

    out = _linear_forward_slab(slab, weight, bias)

    out_flat = out.reshape(-1)
    if pad:
        out_flat = out_flat[:n]
    return out_flat.reshape(n, 1)


if __name__ == "__main__":
    key = jax.random.PRNGKey(0)
    kx, kw, kb = jax.random.split(key, 3)

    # Deterministic parameters mimicking nn.Linear(1, 1) init (uniform(-1, 1) for fan_in=1).
    weight = jax.random.uniform(kw, (1, 1), dtype=jnp.float32, minval=-1.0, maxval=1.0)
    bias = jax.random.uniform(kb, (1,), dtype=jnp.float32, minval=-1.0, maxval=1.0)

    # Small batch consistent with the module: 8 samples, 1 input feature.
    x_small = jax.random.normal(kx, (8, 1), dtype=jnp.float32)
    y_small = linear_forward(x_small, weight, bias)
    jax.block_until_ready(y_small)
    ref_small = x_small @ weight.T + bias
    assert y_small.shape == (8, 1)
    assert jnp.allclose(y_small, ref_small, atol=1e-5, rtol=1e-5), "mismatch vs reference (small)"

    # Ragged-tail path: rows = 547 (< one tile), <=127-element pad, single masked ragged block.
    x_mid = jax.random.normal(kx, (70000, 1), dtype=jnp.float32)
    y_mid = linear_forward(x_mid, weight, bias)
    jax.block_until_ready(y_mid)
    assert y_mid.shape == (70000, 1)
    assert jnp.allclose(y_mid, x_mid @ weight.T + bias, atol=1e-5, rtol=1e-5), \
        "mismatch vs reference (ragged)"

    # Lane-exact, multi-tile path: rows = 8192 -> grid=(2,), no pad and no output-slice copy.
    n_big = 8192 * _LANES
    x_big = jax.random.normal(kx, (n_big, 1), dtype=jnp.float32)
    y_big = linear_forward(x_big, weight, bias)
    jax.block_until_ready(y_big)
    assert y_big.shape == (n_big, 1)
    assert jnp.allclose(y_big, x_big @ weight.T + bias, atol=1e-5, rtol=1e-5), \
        "mismatch vs reference (big)"

    print("KERNEL_OK")
</pallas_src>

<mosaic_0001>
module attributes {stable_mosaic.version = 11 : i64} {
  func.func @linear_kernel(%arg0: i32, %arg1: memref<1x1xf32, #tpu.memory_space<smem>>, %arg2: memref<1x1xf32, #tpu.memory_space<smem>>, %arg3: memref<4096x128xf32, #tpu.memory_space<vmem>>, %arg4: memref<4096x128xf32, #tpu.memory_space<vmem>>) attributes {dimension_semantics = [#tpu.dimension_semantics<parallel>], iteration_bounds = array<i64: 1>, scalar_prefetch = 0 : i64, scratch_operands = 0 : i64, tpu.core_type = #tpu.core_type<tc>, window_params = [{transform_indices = @transform_0, window_bounds = array<i64: 1, 1>}, {transform_indices = @transform_1, window_bounds = array<i64: 1, 1>}, {transform_indices = @transform_2, window_bounds = array<i64: 4096, 128>}, {transform_indices = @transform_3, window_bounds = array<i64: 4096, 128>}]} {
    %c0 = arith.constant 0 : index
    %c0_0 = arith.constant 0 : index
    %0 = memref.load %arg1[%c0, %c0_0] : memref<1x1xf32, #tpu.memory_space<smem>>
    %c0_1 = arith.constant 0 : index
    %c0_2 = arith.constant 0 : index
    %1 = memref.load %arg2[%c0_1, %c0_2] : memref<1x1xf32, #tpu.memory_space<smem>>
    %c0_3 = arith.constant 0 : index
    %c0_4 = arith.constant 0 : index
    %2 = vector.load %arg3[%c0_3, %c0_4] : memref<4096x128xf32, #tpu.memory_space<vmem>>, vector<4096x128xf32>
    %3 = vector.broadcast %0 : f32 to vector<4096x128xf32>
    %4 = arith.mulf %2, %3 : vector<4096x128xf32>
    %5 = vector.broadcast %1 : f32 to vector<4096x128xf32>
    %6 = arith.addf %4, %5 : vector<4096x128xf32>
    %c0_5 = arith.constant 0 : index
    %c0_6 = arith.constant 0 : index
    %7 = vector.load %arg4[%c0_5, %c0_6] : memref<4096x128xf32, #tpu.memory_space<vmem>>, vector<4096x128xf32>
    tpu.vector_store %arg4[%c0_5, %c0_6], %6 {strides = array<i32>} : memref<4096x128xf32, #tpu.memory_space<vmem>>, vector<4096x128xf32>,
    return
  }
  func.func @transform_0(%arg0: i32) -> (i32, i32) {
    %c0_i32 = arith.constant 0 : i32
    %c0_i32_0 = arith.constant 0 : i32
    %c0_i32_1 = arith.constant 0 : i32
    return %c0_i32, %c0_i32_0 : i32, i32
  }
  func.func @transform_1(%arg0: i32) -> (i32, i32) {
    %c0_i32 = arith.constant 0 : i32
    %c0_i32_0 = arith.constant 0 : i32
    %c0_i32_1 = arith.constant 0 : i32
    return %c0_i32, %c0_i32_0 : i32, i32
  }
  func.func @transform_2(%arg0: i32) -> (i32, i32) {
    %c0_i32 = arith.constant 0 : i32
    %c0_i32_0 = arith.constant 0 : i32
    return %arg0, %c0_i32 : i32, i32
  }
  func.func @transform_3(%arg0: i32) -> (i32, i32) {
    %c0_i32 = arith.constant 0 : i32
    %c0_i32_0 = arith.constant 0 : i32
    return %arg0, %c0_i32 : i32, i32
  }
}

</mosaic_0001>

<bundles_post_ra>
// kernel: linear_forward.1
= control target key start
LH: loop header
LB: loop body
LE: loop exit
PB: predicated region body
PF: predicated region fallthrough
CT: control target
= control target key end

     0   :  { %s2141_s0 = inlined_call_operand.<no memory space> [shape: f32[1,1], index: 0, kind: input, shape index: {}]   ;;  %s2142_s1 = inlined_call_operand.<no memory space> [shape: f32[1,1], index: 1, kind: input, shape index: {}]   ;;  %s2143_s2 = inlined_call_operand.vmem [shape: f32[1,128], index: 2, kind: input, shape index: {}]   ;;  %s2144_s3 = inlined_call_operand.vmem [shape: f32[1,128], index: 3, kind: output, shape index: {}]  }
   0x1   :  { %v18_v0 = vld [vmem:[%s2143_s2] sm:$0xff]  ;;  %v530_v1 = vstv %s2141_s0  ;;  %v1043_v2 = vstv %s2142_s1 }
   0x2   :  { %v531_v3 = vmul.f32 %v530_v1, %v18_v0 }
   0x4   :  { %v1044_v4 = vadd.f32 %v1043_v2, %v531_v3 }
   0x6   :  { %1556 = vst [vmem:[#allocation4 + $0xab0] sm:$0xff] %v1044_v4 }
   0xd   :  { %v2086_v5 = vld [vmem:[#allocation4 + $0xab0] sm:$0x1] }
   0xe   :  { %2087 = vst [vmem:[%s2144_s3] sm:$0x1] %v2086_v5 }

</bundles_post_ra>
